<compile_context>
chip_gen: v5e
topology: v5e:2x2
jax: 0.10.0
libtpu: 0.0.40
codegen_flags: <defaults>
</compile_context>

<pallas_src>
import jax
import jax.numpy as jnp
from jax.experimental import pallas as pl
from jax.experimental.pallas import tpu as pltpu


def simple_rnn_kernel(emb_ref, wih_ref, whh_ref, b_ref, wfc_ref, bfc_ref,
                      out_ref):
    L, TB, _ = emb_ref.shape
    H = whh_ref.shape[0]

    # Hoist weight / bias loads out of the time loop.
    wih = wih_ref[...]          # (E, H)  bf16
    whh = whh_ref[...]          # (H, H)  bf16
    b = b_ref[...]              # (1, H)  f32  (= b_ih + b_hh)

    def step(t, h):
        x_t = emb_ref[t].astype(jnp.bfloat16)                      # (TB, E)
        pre = (jnp.dot(x_t, wih, preferred_element_type=jnp.float32)
               + jnp.dot(h.astype(jnp.bfloat16), whh,
                         preferred_element_type=jnp.float32)
               + b)
        return jnp.tanh(pre)                                        # (TB, H) f32

    h0 = jnp.zeros((TB, H), jnp.float32)
    h = jax.lax.fori_loop(0, L, step, h0, unroll=True)

    # Final fc, padded to a lane-dense 128-wide output.
    logits = (jnp.dot(h.astype(jnp.bfloat16), wfc_ref[...],
                      preferred_element_type=jnp.float32)
              + bfc_ref[...])                                       # (TB, Cpad)
    out_ref[...] = logits


def _pick_batch_tile(B):
    """Batch tile: multiple of 8 sublanes, <= 64, keep >= 2 grid steps."""
    if B % 8 != 0 or B <= 8:
        return B
    tb = 8
    while tb * 2 <= 64 and B % (tb * 2) == 0 and (B // (tb * 2)) >= 2:
        tb *= 2
    return tb


def _full_spec(a):
    zeros = (0,) * a.ndim
    return pl.BlockSpec(a.shape, lambda b: zeros)


def simple_rnn_forward(tokens, params):
    """tokens: (B, L) int32 token ids.  Returns (B, num_classes) float32."""
    emb = jnp.take(params["embedding"], tokens, axis=0)    # (B, L, E) f32
    emb = jnp.transpose(emb, (1, 0, 2))                    # (L, B, E)
    L, B, E = emb.shape
    H = params["whh"].shape[0]
    CP = params["wfc"].shape[-1]                           # padded classes (128)
    C = params["num_classes"]

    TB = _pick_batch_tile(B)
    grid = (B // TB,)

    out = pl.pallas_call(
        simple_rnn_kernel,
        out_shape=jax.ShapeDtypeStruct((B, CP), jnp.float32),
        grid=grid,
        in_specs=[
            pl.BlockSpec((L, TB, E), lambda b: (0, b, 0)),   # per-tile sequences
            _full_spec(params["wih"]),
            _full_spec(params["whh"]),
            _full_spec(params["b"]),
            _full_spec(params["wfc"]),
            _full_spec(params["bfc"]),
        ],
        out_specs=pl.BlockSpec((TB, CP), lambda b: (b, 0)),
        compiler_params=pltpu.CompilerParams(
            dimension_semantics=("parallel",)),
    )(emb, params["wih"], params["whh"], params["b"],
      params["wfc"], params["bfc"])
    return out[:, :C]


def simple_rnn_reference(tokens, params):
    """Pure-JAX reference with the same bf16/f32 mixed precision."""
    emb = jnp.take(params["embedding"], tokens, axis=0)    # (B, L, E) f32
    B, L, _ = emb.shape
    H = params["whh"].shape[0]
    h = jnp.zeros((B, H), jnp.float32)
    for t in range(L):
        x_t = emb[:, t, :].astype(jnp.bfloat16)
        pre = (jnp.dot(x_t, params["wih"],
                       preferred_element_type=jnp.float32)
               + jnp.dot(h.astype(jnp.bfloat16), params["whh"],
                         preferred_element_type=jnp.float32)
               + params["b"])
        h = jnp.tanh(pre)
    logits = (jnp.dot(h.astype(jnp.bfloat16), params["wfc"],
                      preferred_element_type=jnp.float32)
              + params["bfc"])
    return logits[:, :params["num_classes"]]


def init_params(key, vocab_size, embed_dim, hidden_dim, num_classes):
    ks = jax.random.split(key, 7)
    s = 0.1
    emb = jax.random.normal(ks[0], (vocab_size, embed_dim), jnp.float32) * s
    emb = emb.at[0].set(0.0)                               # padding_idx=0
    wih = jax.random.normal(ks[1], (embed_dim, hidden_dim), jnp.float32) * s   # W_ih.T
    whh = jax.random.normal(ks[2], (hidden_dim, hidden_dim), jnp.float32) * s  # W_hh.T
    bih = jax.random.normal(ks[3], (hidden_dim,), jnp.float32) * s
    bhh = jax.random.normal(ks[4], (hidden_dim,), jnp.float32) * s
    wfc = jax.random.normal(ks[5], (hidden_dim, num_classes), jnp.float32) * s  # W_fc.T
    bfc = jax.random.normal(ks[6], (num_classes,), jnp.float32) * s

    b = (bih + bhh).reshape(1, hidden_dim)                 # folded RNN bias
    cpad = 128                                             # lane-dense fc output
    wfc_p = jnp.zeros((hidden_dim, cpad), jnp.float32).at[:, :num_classes].set(wfc)
    bfc_p = jnp.zeros((1, cpad), jnp.float32).at[:, :num_classes].set(bfc)

    return dict(
        embedding=emb,
        wih=wih.astype(jnp.bfloat16),
        whh=whh.astype(jnp.bfloat16),
        b=b,
        wfc=wfc_p.astype(jnp.bfloat16),
        bfc=bfc_p,
        num_classes=num_classes,
    )


if __name__ == "__main__":
    vocab_size, embed_dim, hidden_dim, num_classes = 50, 32, 128, 2
    B, L = 16, 16

    key = jax.random.PRNGKey(0)
    pkey, tkey = jax.random.split(key)
    params = init_params(pkey, vocab_size, embed_dim, hidden_dim, num_classes)
    tokens = jax.random.randint(tkey, (B, L), 0, vocab_size, dtype=jnp.int32)

    out = simple_rnn_forward(tokens, params)
    jax.block_until_ready(out)
    assert out.shape == (B, num_classes)
    assert out.dtype == jnp.float32

    ref = simple_rnn_reference(tokens, params)
    assert jnp.allclose(out, ref, atol=2e-2, rtol=2e-2), (
        "max abs diff = %f" % float(jnp.max(jnp.abs(out - ref))))
    print("KERNEL_OK")
</pallas_src>

<mosaic_0001>
module attributes {stable_mosaic.version = 11 : i64} {
  func.func @simple_rnn_kernel(%arg0: i32, %arg1: memref<16x8x32xf32, #tpu.memory_space<vmem>>, %arg2: memref<32x128xbf16, #tpu.memory_space<vmem>>, %arg3: memref<128x128xbf16, #tpu.memory_space<vmem>>, %arg4: memref<1x128xf32, #tpu.memory_space<vmem>>, %arg5: memref<128x128xbf16, #tpu.memory_space<vmem>>, %arg6: memref<1x128xf32, #tpu.memory_space<vmem>>, %arg7: memref<8x128xf32, #tpu.memory_space<vmem>>) attributes {dimension_semantics = [#tpu.dimension_semantics<parallel>], iteration_bounds = array<i64: 2>, scalar_prefetch = 0 : i64, scratch_operands = 0 : i64, tpu.core_type = #tpu.core_type<tc>, window_params = [{transform_indices = @transform_0, window_bounds = array<i64: 16, 8, 32>}, {pipeline_mode = #tpu.pipeline_mode<synchronous>, transform_indices = @transform_1, window_bounds = array<i64: 32, 128>}, {pipeline_mode = #tpu.pipeline_mode<synchronous>, transform_indices = @transform_2, window_bounds = array<i64: 128, 128>}, {pipeline_mode = #tpu.pipeline_mode<synchronous>, transform_indices = @transform_3, window_bounds = array<i64: 1, 128>}, {pipeline_mode = #tpu.pipeline_mode<synchronous>, transform_indices = @transform_4, window_bounds = array<i64: 128, 128>}, {pipeline_mode = #tpu.pipeline_mode<synchronous>, transform_indices = @transform_5, window_bounds = array<i64: 1, 128>}, {transform_indices = @transform_6, window_bounds = array<i64: 8, 128>}]} {
    %c0 = arith.constant 0 : index
    %c0_0 = arith.constant 0 : index
    %0 = vector.load %arg2[%c0, %c0_0] : memref<32x128xbf16, #tpu.memory_space<vmem>>, vector<32x128xbf16>
    %c0_1 = arith.constant 0 : index
    %c0_2 = arith.constant 0 : index
    %1 = vector.load %arg3[%c0_1, %c0_2] : memref<128x128xbf16, #tpu.memory_space<vmem>>, vector<128x128xbf16>
    %c0_3 = arith.constant 0 : index
    %c0_4 = arith.constant 0 : index
    %2 = vector.load %arg4[%c0_3, %c0_4] : memref<1x128xf32, #tpu.memory_space<vmem>>, vector<1x128xf32>
    %cst = arith.constant 0.000000e+00 : f32
    %3 = vector.broadcast %cst : f32 to vector<8x128xf32>
    %c0_i32 = arith.constant 0 : i32
    %4 = arith.index_cast %c0_i32 : i32 to index
    %c0_5 = arith.constant 0 : index
    %c0_6 = arith.constant 0 : index
    %5 = vector.load %arg1[%4, %c0_5, %c0_6] : memref<16x8x32xf32, #tpu.memory_space<vmem>>, vector<1x8x32xf32>
    %6 = vector.shape_cast %5 : vector<1x8x32xf32> to vector<8x32xf32>
    %7 = arith.truncf %6 : vector<8x32xf32> to vector<8x32xbf16>
    %cst_7 = arith.constant dense<0.000000e+00> : vector<8x128xf32>
    %8 = tpu.matmul %7, %0, %cst_7 {dimension_numbers = #tpu.dot_dimension_numbers<[1], [0], [0], [1], [0, 0, 1, 1], [], []>} : vector<8x32xbf16>, vector<32x128xbf16>, vector<8x128xf32> -> vector<8x128xf32>
    %9 = arith.truncf %3 : vector<8x128xf32> to vector<8x128xbf16>
    %cst_8 = arith.constant dense<0.000000e+00> : vector<8x128xf32>
    %10 = tpu.matmul %9, %1, %cst_8 {dimension_numbers = #tpu.dot_dimension_numbers<[1], [0], [0], [1], [0, 0, 1, 1], [], []>} : vector<8x128xbf16>, vector<128x128xbf16>, vector<8x128xf32> -> vector<8x128xf32>
    %11 = arith.addf %8, %10 : vector<8x128xf32>
    %12 = vector.broadcast %2 : vector<1x128xf32> to vector<8x128xf32>
    %13 = arith.addf %11, %12 : vector<8x128xf32>
    %14 = math.tanh %13 : vector<8x128xf32>
    %c1_i32 = arith.constant 1 : i32
    %15 = arith.index_cast %c1_i32 : i32 to index
    %c0_9 = arith.constant 0 : index
    %c0_10 = arith.constant 0 : index
    %16 = vector.load %arg1[%15, %c0_9, %c0_10] : memref<16x8x32xf32, #tpu.memory_space<vmem>>, vector<1x8x32xf32>
    %17 = vector.shape_cast %16 : vector<1x8x32xf32> to vector<8x32xf32>
    %18 = arith.truncf %17 : vector<8x32xf32> to vector<8x32xbf16>
    %cst_11 = arith.constant dense<0.000000e+00> : vector<8x128xf32>
    %19 = tpu.matmul %18, %0, %cst_11 {dimension_numbers = #tpu.dot_dimension_numbers<[1], [0], [0], [1], [0, 0, 1, 1], [], []>} : vector<8x32xbf16>, vector<32x128xbf16>, vector<8x128xf32> -> vector<8x128xf32>
    %20 = arith.truncf %14 : vector<8x128xf32> to vector<8x128xbf16>
    %cst_12 = arith.constant dense<0.000000e+00> : vector<8x128xf32>
    %21 = tpu.matmul %20, %1, %cst_12 {dimension_numbers = #tpu.dot_dimension_numbers<[1], [0], [0], [1], [0, 0, 1, 1], [], []>} : vector<8x128xbf16>, vector<128x128xbf16>, vector<8x128xf32> -> vector<8x128xf32>
    %22 = arith.addf %19, %21 : vector<8x128xf32>
    %23 = vector.broadcast %2 : vector<1x128xf32> to vector<8x128xf32>
    %24 = arith.addf %22, %23 : vector<8x128xf32>
    %25 = math.tanh %24 : vector<8x128xf32>
    %c2_i32 = arith.constant 2 : i32
    %26 = arith.index_cast %c2_i32 : i32 to index
    %c0_13 = arith.constant 0 : index
    %c0_14 = arith.constant 0 : index
    %27 = vector.load %arg1[%26, %c0_13, %c0_14] : memref<16x8x32xf32, #tpu.memory_space<vmem>>, vector<1x8x32xf32>
    %28 = vector.shape_cast %27 : vector<1x8x32xf32> to vector<8x32xf32>
    %29 = arith.truncf %28 : vector<8x32xf32> to vector<8x32xbf16>
    %cst_15 = arith.constant dense<0.000000e+00> : vector<8x128xf32>
    %30 = tpu.matmul %29, %0, %cst_15 {dimension_numbers = #tpu.dot_dimension_numbers<[1], [0], [0], [1], [0, 0, 1, 1], [], []>} : vector<8x32xbf16>, vector<32x128xbf16>, vector<8x128xf32> -> vector<8x128xf32>
    %31 = arith.truncf %25 : vector<8x128xf32> to vector<8x128xbf16>
    %cst_16 = arith.constant dense<0.000000e+00> : vector<8x128xf32>
    %32 = tpu.matmul %31, %1, %cst_16 {dimension_numbers = #tpu.dot_dimension_numbers<[1], [0], [0], [1], [0, 0, 1, 1], [], []>} : vector<8x128xbf16>, vector<128x128xbf16>, vector<8x128xf32> -> vector<8x128xf32>
    %33 = arith.addf %30, %32 : vector<8x128xf32>
    %34 = vector.broadcast %2 : vector<1x128xf32> to vector<8x128xf32>
    %35 = arith.addf %33, %34 : vector<8x128xf32>
    %36 = math.tanh %35 : vector<8x128xf32>
    %c3_i32 = arith.constant 3 : i32
    %37 = arith.index_cast %c3_i32 : i32 to index
    %c0_17 = arith.constant 0 : index
    %c0_18 = arith.constant 0 : index
    %38 = vector.load %arg1[%37, %c0_17, %c0_18] : memref<16x8x32xf32, #tpu.memory_space<vmem>>, vector<1x8x32xf32>
    %39 = vector.shape_cast %38 : vector<1x8x32xf32> to vector<8x32xf32>
    %40 = arith.truncf %39 : vector<8x32xf32> to vector<8x32xbf16>
    %cst_19 = arith.constant dense<0.000000e+00> : vector<8x128xf32>
    %41 = tpu.matmul %40, %0, %cst_19 {dimension_numbers = #tpu.dot_dimension_numbers<[1], [0], [0], [1], [0, 0, 1, 1], [], []>} : vector<8x32xbf16>, vector<32x128xbf16>, vector<8x128xf32> -> vector<8x128xf32>
    %42 = arith.truncf %36 : vector<8x128xf32> to vector<8x128xbf16>
    %cst_20 = arith.constant dense<0.000000e+00> : vector<8x128xf32>
    %43 = tpu.matmul %42, %1, %cst_20 {dimension_numbers = #tpu.dot_dimension_numbers<[1], [0], [0], [1], [0, 0, 1, 1], [], []>} : vector<8x128xbf16>, vector<128x128xbf16>, vector<8x128xf32> -> vector<8x128xf32>
    %44 = arith.addf %41, %43 : vector<8x128xf32>
    %45 = vector.broadcast %2 : vector<1x128xf32> to vector<8x128xf32>
    %46 = arith.addf %44, %45 : vector<8x128xf32>
    %47 = math.tanh %46 : vector<8x128xf32>
    %c4_i32 = arith.constant 4 : i32
    %48 = arith.index_cast %c4_i32 : i32 to index
    %c0_21 = arith.constant 0 : index
    %c0_22 = arith.constant 0 : index
    %49 = vector.load %arg1[%48, %c0_21, %c0_22] : memref<16x8x32xf32, #tpu.memory_space<vmem>>, vector<1x8x32xf32>
    %50 = vector.shape_cast %49 : vector<1x8x32xf32> to vector<8x32xf32>
    %51 = arith.truncf %50 : vector<8x32xf32> to vector<8x32xbf16>
    %cst_23 = arith.constant dense<0.000000e+00> : vector<8x128xf32>
    %52 = tpu.matmul %51, %0, %cst_23 {dimension_numbers = #tpu.dot_dimension_numbers<[1], [0], [0], [1], [0, 0, 1, 1], [], []>} : vector<8x32xbf16>, vector<32x128xbf16>, vector<8x128xf32> -> vector<8x128xf32>
    %53 = arith.truncf %47 : vector<8x128xf32> to vector<8x128xbf16>
    %cst_24 = arith.constant dense<0.000000e+00> : vector<8x128xf32>
    %54 = tpu.matmul %53, %1, %cst_24 {dimension_numbers = #tpu.dot_dimension_numbers<[1], [0], [0], [1], [0, 0, 1, 1], [], []>} : vector<8x128xbf16>, vector<128x128xbf16>, vector<8x128xf32> -> vector<8x128xf32>
    %55 = arith.addf %52, %54 : vector<8x128xf32>
    %56 = vector.broadcast %2 : vector<1x128xf32> to vector<8x128xf32>
    %57 = arith.addf %55, %56 : vector<8x128xf32>
    %58 = math.tanh %57 : vector<8x128xf32>
    %c5_i32 = arith.constant 5 : i32
    %59 = arith.index_cast %c5_i32 : i32 to index
    %c0_25 = arith.constant 0 : index
    %c0_26 = arith.constant 0 : index
    %60 = vector.load %arg1[%59, %c0_25, %c0_26] : memref<16x8x32xf32, #tpu.memory_space<vmem>>, vector<1x8x32xf32>
    %61 = vector.shape_cast %60 : vector<1x8x32xf32> to vector<8x32xf32>
    %62 = arith.truncf %61 : vector<8x32xf32> to vector<8x32xbf16>
    %cst_27 = arith.constant dense<0.000000e+00> : vector<8x128xf32>
    %63 = tpu.matmul %62, %0, %cst_27 {dimension_numbers = #tpu.dot_dimension_numbers<[1], [0], [0], [1], [0, 0, 1, 1], [], []>} : vector<8x32xbf16>, vector<32x128xbf16>, vector<8x128xf32> -> vector<8x128xf32>
    %64 = arith.truncf %58 : vector<8x128xf32> to vector<8x128xbf16>
    %cst_28 = arith.constant dense<0.000000e+00> : vector<8x128xf32>
    %65 = tpu.matmul %64, %1, %cst_28 {dimension_numbers = #tpu.dot_dimension_numbers<[1], [0], [0], [1], [0, 0, 1, 1], [], []>} : vector<8x128xbf16>, vector<128x128xbf16>, vector<8x128xf32> -> vector<8x128xf32>
    %66 = arith.addf %63, %65 : vector<8x128xf32>
    %67 = vector.broadcast %2 : vector<1x128xf32> to vector<8x128xf32>
    %68 = arith.addf %66, %67 : vector<8x128xf32>
    %69 = math.tanh %68 : vector<8x128xf32>
    %c6_i32 = arith.constant 6 : i32
    %70 = arith.index_cast %c6_i32 : i32 to index
    %c0_29 = arith.constant 0 : index
    %c0_30 = arith.constant 0 : index
    %71 = vector.load %arg1[%70, %c0_29, %c0_30] : memref<16x8x32xf32, #tpu.memory_space<vmem>>, vector<1x8x32xf32>
    %72 = vector.shape_cast %71 : vector<1x8x32xf32> to vector<8x32xf32>
    %73 = arith.truncf %72 : vector<8x32xf32> to vector<8x32xbf16>
    %cst_31 = arith.constant dense<0.000000e+00> : vector<8x128xf32>
    %74 = tpu.matmul %73, %0, %cst_31 {dimension_numbers = #tpu.dot_dimension_numbers<[1], [0], [0], [1], [0, 0, 1, 1], [], []>} : vector<8x32xbf16>, vector<32x128xbf16>, vector<8x128xf32> -> vector<8x128xf32>
    %75 = arith.truncf %69 : vector<8x128xf32> to vector<8x128xbf16>
    %cst_32 = arith.constant dense<0.000000e+00> : vector<8x128xf32>
    %76 = tpu.matmul %75, %1, %cst_32 {dimension_numbers = #tpu.dot_dimension_numbers<[1], [0], [0], [1], [0, 0, 1, 1], [], []>} : vector<8x128xbf16>, vector<128x128xbf16>, vector<8x128xf32> -> vector<8x128xf32>
    %77 = arith.addf %74, %76 : vector<8x128xf32>
    %78 = vector.broadcast %2 : vector<1x128xf32> to vector<8x128xf32>
    %79 = arith.addf %77, %78 : vector<8x128xf32>
    %80 = math.tanh %79 : vector<8x128xf32>
    %c7_i32 = arith.constant 7 : i32
    %81 = arith.index_cast %c7_i32 : i32 to index
    %c0_33 = arith.constant 0 : index
    %c0_34 = arith.constant 0 : index
    %82 = vector.load %arg1[%81, %c0_33, %c0_34] : memref<16x8x32xf32, #tpu.memory_space<vmem>>, vector<1x8x32xf32>
    %83 = vector.shape_cast %82 : vector<1x8x32xf32> to vector<8x32xf32>
    %84 = arith.truncf %83 : vector<8x32xf32> to vector<8x32xbf16>
    %cst_35 = arith.constant dense<0.000000e+00> : vector<8x128xf32>
    %85 = tpu.matmul %84, %0, %cst_35 {dimension_numbers = #tpu.dot_dimension_numbers<[1], [0], [0], [1], [0, 0, 1, 1], [], []>} : vector<8x32xbf16>, vector<32x128xbf16>, vector<8x128xf32> -> vector<8x128xf32>
    %86 = arith.truncf %80 : vector<8x128xf32> to vector<8x128xbf16>
    %cst_36 = arith.constant dense<0.000000e+00> : vector<8x128xf32>
    %87 = tpu.matmul %86, %1, %cst_36 {dimension_numbers = #tpu.dot_dimension_numbers<[1], [0], [0], [1], [0, 0, 1, 1], [], []>} : vector<8x128xbf16>, vector<128x128xbf16>, vector<8x128xf32> -> vector<8x128xf32>
    %88 = arith.addf %85, %87 : vector<8x128xf32>
    %89 = vector.broadcast %2 : vector<1x128xf32> to vector<8x128xf32>
    %90 = arith.addf %88, %89 : vector<8x128xf32>
    %91 = math.tanh %90 : vector<8x128xf32>
    %c8_i32 = arith.constant 8 : i32
    %92 = arith.index_cast %c8_i32 : i32 to index
    %c0_37 = arith.constant 0 : index
    %c0_38 = arith.constant 0 : index
    %93 = vector.load %arg1[%92, %c0_37, %c0_38] : memref<16x8x32xf32, #tpu.memory_space<vmem>>, vector<1x8x32xf32>
    %94 = vector.shape_cast %93 : vector<1x8x32xf32> to vector<8x32xf32>
    %95 = arith.truncf %94 : vector<8x32xf32> to vector<8x32xbf16>
    %cst_39 = arith.constant dense<0.000000e+00> : vector<8x128xf32>
    %96 = tpu.matmul %95, %0, %cst_39 {dimension_numbers = #tpu.dot_dimension_numbers<[1], [0], [0], [1], [0, 0, 1, 1], [], []>} : vector<8x32xbf16>, vector<32x128xbf16>, vector<8x128xf32> -> vector<8x128xf32>
    %97 = arith.truncf %91 : vector<8x128xf32> to vector<8x128xbf16>
    %cst_40 = arith.constant dense<0.000000e+00> : vector<8x128xf32>
    %98 = tpu.matmul %97, %1, %cst_40 {dimension_numbers = #tpu.dot_dimension_numbers<[1], [0], [0], [1], [0, 0, 1, 1], [], []>} : vector<8x128xbf16>, vector<128x128xbf16>, vector<8x128xf32> -> vector<8x128xf32>
    %99 = arith.addf %96, %98 : vector<8x128xf32>
    %100 = vector.broadcast %2 : vector<1x128xf32> to vector<8x128xf32>
    %101 = arith.addf %99, %100 : vector<8x128xf32>
    %102 = math.tanh %101 : vector<8x128xf32>
    %c9_i32 = arith.constant 9 : i32
    %103 = arith.index_cast %c9_i32 : i32 to index
    %c0_41 = arith.constant 0 : index
    %c0_42 = arith.constant 0 : index
    %104 = vector.load %arg1[%103, %c0_41, %c0_42] : memref<16x8x32xf32, #tpu.memory_space<vmem>>, vector<1x8x32xf32>
    %105 = vector.shape_cast %104 : vector<1x8x32xf32> to vector<8x32xf32>
    %106 = arith.truncf %105 : vector<8x32xf32> to vector<8x32xbf16>
    %cst_43 = arith.constant dense<0.000000e+00> : vector<8x128xf32>
    %107 = tpu.matmul %106, %0, %cst_43 {dimension_numbers = #tpu.dot_dimension_numbers<[1], [0], [0], [1], [0, 0, 1, 1], [], []>} : vector<8x32xbf16>, vector<32x128xbf16>, vector<8x128xf32> -> vector<8x128xf32>
    %108 = arith.truncf %102 : vector<8x128xf32> to vector<8x128xbf16>
    %cst_44 = arith.constant dense<0.000000e+00> : vector<8x128xf32>
    %109 = tpu.matmul %108, %1, %cst_44 {dimension_numbers = #tpu.dot_dimension_numbers<[1], [0], [0], [1], [0, 0, 1, 1], [], []>} : vector<8x128xbf16>, vector<128x128xbf16>, vector<8x128xf32> -> vector<8x128xf32>
    %110 = arith.addf %107, %109 : vector<8x128xf32>
    %111 = vector.broadcast %2 : vector<1x128xf32> to vector<8x128xf32>
    %112 = arith.addf %110, %111 : vector<8x128xf32>
    %113 = math.tanh %112 : vector<8x128xf32>
    %c10_i32 = arith.constant 10 : i32
    %114 = arith.index_cast %c10_i32 : i32 to index
    %c0_45 = arith.constant 0 : index
    %c0_46 = arith.constant 0 : index
    %115 = vector.load %arg1[%114, %c0_45, %c0_46] : memref<16x8x32xf32, #tpu.memory_space<vmem>>, vector<1x8x32xf32>
    %116 = vector.shape_cast %115 : vector<1x8x32xf32> to vector<8x32xf32>
    %117 = arith.truncf %116 : vector<8x32xf32> to vector<8x32xbf16>
    %cst_47 = arith.constant dense<0.000000e+00> : vector<8x128xf32>
    %118 = tpu.matmul %117, %0, %cst_47 {dimension_numbers = #tpu.dot_dimension_numbers<[1], [0], [0], [1], [0, 0, 1, 1], [], []>} : vector<8x32xbf16>, vector<32x128xbf16>, vector<8x128xf32> -> vector<8x128xf32>
    %119 = arith.truncf %113 : vector<8x128xf32> to vector<8x128xbf16>
    %cst_48 = arith.constant dense<0.000000e+00> : vector<8x128xf32>
    %120 = tpu.matmul %119, %1, %cst_48 {dimension_numbers = #tpu.dot_dimension_numbers<[1], [0], [0], [1], [0, 0, 1, 1], [], []>} : vector<8x128xbf16>, vector<128x128xbf16>, vector<8x128xf32> -> vector<8x128xf32>
    %121 = arith.addf %118, %120 : vector<8x128xf32>
    %122 = vector.broadcast %2 : vector<1x128xf32> to vector<8x128xf32>
    %123 = arith.addf %121, %122 : vector<8x128xf32>
    %124 = math.tanh %123 : vector<8x128xf32>
    %c11_i32 = arith.constant 11 : i32
    %125 = arith.index_cast %c11_i32 : i32 to index
    %c0_49 = arith.constant 0 : index
    %c0_50 = arith.constant 0 : index
    %126 = vector.load %arg1[%125, %c0_49, %c0_50] : memref<16x8x32xf32, #tpu.memory_space<vmem>>, vector<1x8x32xf32>
    %127 = vector.shape_cast %126 : vector<1x8x32xf32> to vector<8x32xf32>
    %128 = arith.truncf %127 : vector<8x32xf32> to vector<8x32xbf16>
    %cst_51 = arith.constant dense<0.000000e+00> : vector<8x128xf32>
    %129 = tpu.matmul %128, %0, %cst_51 {dimension_numbers = #tpu.dot_dimension_numbers<[1], [0], [0], [1], [0, 0, 1, 1], [], []>} : vector<8x32xbf16>, vector<32x128xbf16>, vector<8x128xf32> -> vector<8x128xf32>
    %130 = arith.truncf %124 : vector<8x128xf32> to vector<8x128xbf16>
    %cst_52 = arith.constant dense<0.000000e+00> : vector<8x128xf32>
    %131 = tpu.matmul %130, %1, %cst_52 {dimension_numbers = #tpu.dot_dimension_numbers<[1], [0], [0], [1], [0, 0, 1, 1], [], []>} : vector<8x128xbf16>, vector<128x128xbf16>, vector<8x128xf32> -> vector<8x128xf32>
    %132 = arith.addf %129, %131 : vector<8x128xf32>
    %133 = vector.broadcast %2 : vector<1x128xf32> to vector<8x128xf32>
    %134 = arith.addf %132, %133 : vector<8x128xf32>
    %135 = math.tanh %134 : vector<8x128xf32>
    %c12_i32 = arith.constant 12 : i32
    %136 = arith.index_cast %c12_i32 : i32 to index
    %c0_53 = arith.constant 0 : index
    %c0_54 = arith.constant 0 : index
    %137 = vector.load %arg1[%136, %c0_53, %c0_54] : memref<16x8x32xf32, #tpu.memory_space<vmem>>, vector<1x8x32xf32>
    %138 = vector.shape_cast %137 : vector<1x8x32xf32> to vector<8x32xf32>
    %139 = arith.truncf %138 : vector<8x32xf32> to vector<8x32xbf16>
    %cst_55 = arith.constant dense<0.000000e+00> : vector<8x128xf32>
    %140 = tpu.matmul %139, %0, %cst_55 {dimension_numbers = #tpu.dot_dimension_numbers<[1], [0], [0], [1], [0, 0, 1, 1], [], []>} : vector<8x32xbf16>, vector<32x128xbf16>, vector<8x128xf32> -> vector<8x128xf32>
    %141 = arith.truncf %135 : vector<8x128xf32> to vector<8x128xbf16>
    %cst_56 = arith.constant dense<0.000000e+00> : vector<8x128xf32>
    %142 = tpu.matmul %141, %1, %cst_56 {dimension_numbers = #tpu.dot_dimension_numbers<[1], [0], [0], [1], [0, 0, 1, 1], [], []>} : vector<8x128xbf16>, vector<128x128xbf16>, vector<8x128xf32> -> vector<8x128xf32>
    %143 = arith.addf %140, %142 : vector<8x128xf32>
    %144 = vector.broadcast %2 : vector<1x128xf32> to vector<8x128xf32>
    %145 = arith.addf %143, %144 : vector<8x128xf32>
    %146 = math.tanh %145 : vector<8x128xf32>
    %c13_i32 = arith.constant 13 : i32
    %147 = arith.index_cast %c13_i32 : i32 to index
    %c0_57 = arith.constant 0 : index
    %c0_58 = arith.constant 0 : index
    %148 = vector.load %arg1[%147, %c0_57, %c0_58] : memref<16x8x32xf32, #tpu.memory_space<vmem>>, vector<1x8x32xf32>
    %149 = vector.shape_cast %148 : vector<1x8x32xf32> to vector<8x32xf32>
    %150 = arith.truncf %149 : vector<8x32xf32> to vector<8x32xbf16>
    %cst_59 = arith.constant dense<0.000000e+00> : vector<8x128xf32>
    %151 = tpu.matmul %150, %0, %cst_59 {dimension_numbers = #tpu.dot_dimension_numbers<[1], [0], [0], [1], [0, 0, 1, 1], [], []>} : vector<8x32xbf16>, vector<32x128xbf16>, vector<8x128xf32> -> vector<8x128xf32>
    %152 = arith.truncf %146 : vector<8x128xf32> to vector<8x128xbf16>
    %cst_60 = arith.constant dense<0.000000e+00> : vector<8x128xf32>
    %153 = tpu.matmul %152, %1, %cst_60 {dimension_numbers = #tpu.dot_dimension_numbers<[1], [0], [0], [1], [0, 0, 1, 1], [], []>} : vector<8x128xbf16>, vector<128x128xbf16>, vector<8x128xf32> -> vector<8x128xf32>
    %154 = arith.addf %151, %153 : vector<8x128xf32>
    %155 = vector.broadcast %2 : vector<1x128xf32> to vector<8x128xf32>
    %156 = arith.addf %154, %155 : vector<8x128xf32>
    %157 = math.tanh %156 : vector<8x128xf32>
    %c14_i32 = arith.constant 14 : i32
    %158 = arith.index_cast %c14_i32 : i32 to index
    %c0_61 = arith.constant 0 : index
    %c0_62 = arith.constant 0 : index
    %159 = vector.load %arg1[%158, %c0_61, %c0_62] : memref<16x8x32xf32, #tpu.memory_space<vmem>>, vector<1x8x32xf32>
    %160 = vector.shape_cast %159 : vector<1x8x32xf32> to vector<8x32xf32>
    %161 = arith.truncf %160 : vector<8x32xf32> to vector<8x32xbf16>
    %cst_63 = arith.constant dense<0.000000e+00> : vector<8x128xf32>
    %162 = tpu.matmul %161, %0, %cst_63 {dimension_numbers = #tpu.dot_dimension_numbers<[1], [0], [0], [1], [0, 0, 1, 1], [], []>} : vector<8x32xbf16>, vector<32x128xbf16>, vector<8x128xf32> -> vector<8x128xf32>
    %163 = arith.truncf %157 : vector<8x128xf32> to vector<8x128xbf16>
    %cst_64 = arith.constant dense<0.000000e+00> : vector<8x128xf32>
    %164 = tpu.matmul %163, %1, %cst_64 {dimension_numbers = #tpu.dot_dimension_numbers<[1], [0], [0], [1], [0, 0, 1, 1], [], []>} : vector<8x128xbf16>, vector<128x128xbf16>, vector<8x128xf32> -> vector<8x128xf32>
    %165 = arith.addf %162, %164 : vector<8x128xf32>
    %166 = vector.broadcast %2 : vector<1x128xf32> to vector<8x128xf32>
    %167 = arith.addf %165, %166 : vector<8x128xf32>
    %168 = math.tanh %167 : vector<8x128xf32>
    %c15_i32 = arith.constant 15 : i32
    %169 = arith.index_cast %c15_i32 : i32 to index
    %c0_65 = arith.constant 0 : index
    %c0_66 = arith.constant 0 : index
    %170 = vector.load %arg1[%169, %c0_65, %c0_66] : memref<16x8x32xf32, #tpu.memory_space<vmem>>, vector<1x8x32xf32>
    %171 = vector.shape_cast %170 : vector<1x8x32xf32> to vector<8x32xf32>
    %172 = arith.truncf %171 : vector<8x32xf32> to vector<8x32xbf16>
    %cst_67 = arith.constant dense<0.000000e+00> : vector<8x128xf32>
    %173 = tpu.matmul %172, %0, %cst_67 {dimension_numbers = #tpu.dot_dimension_numbers<[1], [0], [0], [1], [0, 0, 1, 1], [], []>} : vector<8x32xbf16>, vector<32x128xbf16>, vector<8x128xf32> -> vector<8x128xf32>
    %174 = arith.truncf %168 : vector<8x128xf32> to vector<8x128xbf16>
    %cst_68 = arith.constant dense<0.000000e+00> : vector<8x128xf32>
    %175 = tpu.matmul %174, %1, %cst_68 {dimension_numbers = #tpu.dot_dimension_numbers<[1], [0], [0], [1], [0, 0, 1, 1], [], []>} : vector<8x128xbf16>, vector<128x128xbf16>, vector<8x128xf32> -> vector<8x128xf32>
    %176 = arith.addf %173, %175 : vector<8x128xf32>
    %177 = vector.broadcast %2 : vector<1x128xf32> to vector<8x128xf32>
    %178 = arith.addf %176, %177 : vector<8x128xf32>
    %179 = math.tanh %178 : vector<8x128xf32>
    %c16_i32 = arith.constant 16 : i32
    %180 = arith.truncf %179 : vector<8x128xf32> to vector<8x128xbf16>
    %c0_69 = arith.constant 0 : index
    %c0_70 = arith.constant 0 : index
    %181 = vector.load %arg5[%c0_69, %c0_70] : memref<128x128xbf16, #tpu.memory_space<vmem>>, vector<128x128xbf16>
    %cst_71 = arith.constant dense<0.000000e+00> : vector<8x128xf32>
    %182 = tpu.matmul %180, %181, %cst_71 {dimension_numbers = #tpu.dot_dimension_numbers<[1], [0], [0], [1], [0, 0, 1, 1], [], []>} : vector<8x128xbf16>, vector<128x128xbf16>, vector<8x128xf32> -> vector<8x128xf32>
    %c0_72 = arith.constant 0 : index
    %c0_73 = arith.constant 0 : index
    %183 = vector.load %arg6[%c0_72, %c0_73] : memref<1x128xf32, #tpu.memory_space<vmem>>, vector<1x128xf32>
    %184 = vector.broadcast %183 : vector<1x128xf32> to vector<8x128xf32>
    %185 = arith.addf %182, %184 : vector<8x128xf32>
    %c0_74 = arith.constant 0 : index
    %c0_75 = arith.constant 0 : index
    %186 = vector.load %arg7[%c0_74, %c0_75] : memref<8x128xf32, #tpu.memory_space<vmem>>, vector<8x128xf32>
    tpu.vector_store %arg7[%c0_74, %c0_75], %185 {strides = array<i32>} : memref<8x128xf32, #tpu.memory_space<vmem>>, vector<8x128xf32>,
    return
  }
  func.func @transform_0(%arg0: i32) -> (i32, i32, i32) {
    %c0_i32 = arith.constant 0 : i32
    %c0_i32_0 = arith.constant 0 : i32
    %c0_i32_1 = arith.constant 0 : i32
    return %c0_i32, %arg0, %c0_i32_0 : i32, i32, i32
  }
  func.func @transform_1(%arg0: i32) -> (i32, i32) {
    %c0_i32 = arith.constant 0 : i32
    %c0_i32_0 = arith.constant 0 : i32
    %c0_i32_1 = arith.constant 0 : i32
    return %c0_i32, %c0_i32_0 : i32, i32
  }
  func.func @transform_2(%arg0: i32) -> (i32, i32) {
    %c0_i32 = arith.constant 0 : i32
    %c0_i32_0 = arith.constant 0 : i32
    %c0_i32_1 = arith.constant 0 : i32
    return %c0_i32, %c0_i32_0 : i32, i32
  }
  func.func @transform_3(%arg0: i32) -> (i32, i32) {
    %c0_i32 = arith.constant 0 : i32
    %c0_i32_0 = arith.constant 0 : i32
    %c0_i32_1 = arith.constant 0 : i32
    return %c0_i32, %c0_i32_0 : i32, i32
  }
  func.func @transform_4(%arg0: i32) -> (i32, i32) {
    %c0_i32 = arith.constant 0 : i32
    %c0_i32_0 = arith.constant 0 : i32
    %c0_i32_1 = arith.constant 0 : i32
    return %c0_i32, %c0_i32_0 : i32, i32
  }
  func.func @transform_5(%arg0: i32) -> (i32, i32) {
    %c0_i32 = arith.constant 0 : i32
    %c0_i32_0 = arith.constant 0 : i32
    %c0_i32_1 = arith.constant 0 : i32
    return %c0_i32, %c0_i32_0 : i32, i32
  }
  func.func @transform_6(%arg0: i32) -> (i32, i32) {
    %c0_i32 = arith.constant 0 : i32
    %c0_i32_0 = arith.constant 0 : i32
    return %arg0, %c0_i32 : i32, i32
  }
}

</mosaic_0001>

<bundles_post_ra>
// kernel: tpu_custom_call.1
= control target key start
LH: loop header
LB: loop body
LE: loop exit
PB: predicated region body
PF: predicated region fallthrough
CT: control target
= control target key end

     0   :  { %s2058_s0 = inlined_call_operand.hbm [shape: f32[16,16,32], index: 0, kind: input, shape index: {}]   ;;  %s2059_s1 = inlined_call_operand.hbm [shape: bf16[32,128], index: 1, kind: input, shape index: {}]   ;;  %s2060_s2 = inlined_call_operand.hbm [shape: bf16[128,128], index: 2, kind: input, shape index: {}]   ;;  %s2061_s3 = inlined_call_operand.vmem [shape: f32[1,128], index: 3, kind: input, shape index: {}]   ;;  %s2062_s4 = inlined_call_operand.hbm [shape: bf16[128,128], index: 4, kind: input, shape index: {}]   ;;  %s2063_s5 = inlined_call_operand.vmem [shape: f32[1,128], index: 5, kind: input, shape index: {}]   ;;  %s2064_s6 = inlined_call_operand.hbm [shape: f32[16,128], index: 6, kind: output, shape index: {}]  }
   0x1   :  { %2065 = sst [smem:[#allocation15_spill]] %s2059_s1 }
   0x2   :  { %11 = vsyncpa [#allocation3], 0 }
   0x3   :  { %13 = vsyncpa [#allocation3 + $0x1], 0 }
   0x4   :  { %14 = vsyncpa [#allocation6], 0 }
   0x5   :  { %15 = vsyncpa [#allocation9], 0 }
   0x6   :  { %16 = vsyncpa [#allocation4], 0 }
   0x7   :  { %18 = vsyncpa [#allocation4 + $0x1], 0  ;;  %s1659_s21 = smov 0   ;;  %s1661_s22 = smov 0  }
   0x8   :  { %s1663_s23 = smov 0   ;;  %s1665_s24 = smov 0  }
   0x9 LB: > { %s1680_s25 = sadd.s32 4294967295, %s1613_s24   ;;  %s1163_s26 = sadd.s32 4294967294, %s1613_s24   ;;  %s1613_s24 = sphi %s1665_s24, %s2077_s24   ;;  %s1609_s23 = sphi %s1663_s23, %s2076_s23   ;;  %s1605_s22 = sphi %s1661_s22, %s2075_s22   ;;  %s1601_s21 = sphi %s1659_s21, %s2074_s21  }
   0xa   : > { %p44_p0 = scmp.ne.s32.totalorder %s1605_s22, %s1601_s21  ;;  %p45_p1 = scmp.eq.s32.totalorder %s1680_s25, 0 }
   0xb   : > { %p173_p2 = scmp.eq.s32.totalorder %s1680_s25, 1  ;;  %p179_p3 = scmp.eq.s32.totalorder %s1163_s26, 1 }
   0xc   : > { %p1689_p4 = por %p45_p1, %p44_p0  ;;  %p1164_p5 = scmp.ge.s32.totalorder %s1613_s24, 1 }
   0xd   : > { %p1694_p6 = por %p179_p3, %p44_p0  ;;  %p186_p7 = scmp.lt.s32.totalorder %s1613_s24, 3 }
   0xe   : > { %s2068_s1 = sld [smem:[#allocation15_spill]]  ;;  %s1615_s9 = smov [#allocation5]  }
   0xf   : > { %p1702_p8 = pnand %p1164_p5, %p186_p7  ;;  %s199_s10 = sshll.u32 %s1615_s9, 4  ;;  %s200_s10 = int_to_ptr.vmem [resolvable:$true] %s199_s10 }
  0x10   : > { %s211_s14 = sshll.u32 %s2060_s2, 4  ;;  %s1616_s15 = smov 64   ;;  %s212_s14 = int_to_ptr.hbm [resolvable:$true] %s211_s14 }
  0x11   : > { %p1318_p9 = pneg %p1702_p8  ;;  %s1617_s16 = smov 4  }
  0x12   : > { %s1618_s17 = smov [#allocation7]   ;;  %s228_s26 = sshll.u32 %s2062_s4, 4  ;;  %s229_s26 = int_to_ptr.hbm [resolvable:$true] %s228_s26 }
  0x13   : > { %p1710_p10 = pnand %p1318_p9, %p45_p1  ;;  %s213_s18 = sshll.u32 %s1618_s17, 4  ;;  %s214_s18 = int_to_ptr.vmem [resolvable:$true] %s213_s18 }
  0x14   : > { %s197_s7 = sshll.u32 %s2068_s1, 4  ;;  %s1619_s29 = smov [#allocation8]   ;;  %s198_s7 = int_to_ptr.hbm [resolvable:$true] %s197_s7 }
  0x15   : > { %1321 = dma.hbm_to_vmem [thread:$0]  (!%p1710_p10), %s198_s7, 256, %s200_s10, [#allocation6], %s1616_s15, %s1616_s15, %s1617_s16  }
  0x16   : > { %1324 = dma.hbm_to_vmem [thread:$0]  (!%p1710_p10), %s212_s14, 1024, %s214_s18, [#allocation6], %s1616_s15, %s1616_s15, %s1617_s16  }
  0x17   : > { %s230_s30 = sshll.u32 %s1619_s29, 4  ;;  %s1726_s7 = sadd.s32 1, %s1613_s24   ;;  %s231_s30 = int_to_ptr.vmem [resolvable:$true] %s230_s30 }
  0x18   : > { %1327 = dma.hbm_to_vmem [thread:$0]  (!%p1710_p10), %s229_s26, 1024, %s231_s30, [#allocation9], %s1616_s15, %s1616_s15, %s1617_s16  }
  0x19   : > { %s28_s9 = ssub.s32 %s1613_s24, %s1726_s7  ;;  %s31_s10 = sadd.s32 1, %s1609_s23 }
  0x1a   : > { %p29_p12 = scmp.eq.s32.totalorder %s28_s9, 0  ;;  %p38_p13 = scmp.ne.s32.totalorder %s1609_s23, %s1605_s22 }
  0x1b   : > { %p39_p0 = scmp.eq.s32.totalorder %s1613_s24, 0  ;;  %p1339_p3 = scmp.lt.s32.totalorder %s1613_s24, 2 }
  0x1c   : > { %s1738_s12 = scalar_select %p29_p12, %s1609_s23, %s31_s10  }
  0x1d   : > { %p40_p5 = por %p39_p0, %p38_p13  ;;  %p1742_p7 = por %p173_p2, %p38_p13 }
  0x1e   : > { %s247_s14 = sand.u32 1, %s1609_s23   ;;  %s1170_s17 = sshll.u32 %s1613_s24, 3 }
  0x1f   : > { %s1169_s11 = sshll.u32 %s247_s14, 7  ;;  %s255_s16 = scalar_lea.hbm %s2058_s0, %s1170_s17 }
  0x20   : > { %s256_s19 = sshll.u32 %s255_s16, 4  ;;  %s251_s20 = scalar_lea.vmem [#allocation2], %s1169_s11  ;;  %s257_s19 = int_to_ptr.hbm [resolvable:$true] %s256_s19 }
  0x21   : > { %s258_s26 = sshll.u32 %s251_s20, 4  ;;  %p1753_p9 = pnand %p1339_p3, %p40_p5  ;;  %s259_s26 = int_to_ptr.vmem [resolvable:$true] %s258_s26 }
  0x22   : > { %s248_s30 = scalar_lea.sflag [#allocation3], %s247_s14  ;;  %s1509_s9 = sshra.s32 %s257_s19, 4  ;;  %s1510_s9 = int_to_ptr.hbm [resolvable:$true] %s1509_s9 }
  0x23   : > { %s1511_s10 = scalar_lea.hbm %s1510_s9, 128  ;;  %p1513_p10 = pneg %p1753_p9 }
  0x24   : > { %p1512_p2 = scmp.ne.s32.totalorder %s1510_s9, %s1511_s10  ;;  %s1516_s18 = scalar_lea.hbm %s2058_s0, 256 }
  0x25   : > { %p1517_p0 = scmp.lt.s32.totalorder %s1510_s9, %s2058_s0  ;;  %p1518_p3 = scmp.lt.s32.totalorder %s1516_s18, %s1511_s10 }
  0x26   : > { %p1514_p12 = pnand %p1513_p10, %p1512_p2 }
  0x27   : > { %p1519_p5 = por %p1518_p3, %p1517_p0 }
  0x28   : > { %p1515_p13 = pneg %p1514_p12 }
  0x2a   : > { %p1520_p11 = pnand %p1519_p5, %p1515_p13 }
  0x2c   : > { %1523 = shalt.err (!%p1520_p11)
}
  0x2d   : > { %s1620_s14 = smov 256   ;;  %s1621_s20 = smov 128  }
  0x2e   : > { %s1622_s1 = smov 8   ;;  %270 = sbr.rel (%p1702_p8) target bundleno = 2516 (0x9d4), region = 44 }
  0x2f   : > { %1331 = dma.hbm_to_vmem [thread:$0]  (!%p1753_p9), %s257_s19, 2048, %s259_s26, %s248_s30, %s1620_s14, %s1621_s20, %s1622_s1  }
  0x30   : > { %s1770_s17 = sand.u32 (!%p1702_p8), 1, %s1605_s22  }
  0x31   : > { %s1172_s9 = sshll.u32 (!%p1702_p8), %s1770_s17, 7  ;;  %s273_s10 = scalar_lea.sflag (!%p1702_p8), [#allocation3], %s1770_s17 }
  0x32   : > { %s1774_s11 = scalar_lea.vmem (!%p1702_p8), [#allocation2], %s1172_s9 }
  0x33   : > { %1584 = dma.done.wait (%p1689_p4), %s273_s10, 2048  }
  0x34   : > { %1586 = vsyncadd (%p1689_p4), %s273_s10, 4294965248 }
  0x35   : > { %1588 = dma.done.wait (%p45_p1), [#allocation6], 1280  }
  0x36   : > { %1590 = vsyncadd (%p45_p1), [#allocation6], 4294966016 }
  0x37   : > { %1592 = dma.done.wait (%p45_p1), [#allocation9], 1024  }
  0x38   : > { %1594 = vsyncadd (%p45_p1), [#allocation9], 4294966272  ;;  %v1788_v0 = vld [vmem:[#allocation7 + $0x38] sm:$0xff]  ;;  %v1793_v2 = vld [vmem:[#allocation7 + $0x30] sm:$0xff]  ;;  %vm418_vm0 = vcmask 261120   ;;  %v1623_v12 = vmov 0  }
  0x39   : > { %v1790_v1 = vld [vmem:[#allocation5 + $0x8] sm:$0xff]  ;;  %393 = vmatpush.bf16.msra.mxu0 %v1788_v0  ;;  %444 = vmatpush.bf16.msra.mxu2 %v1788_v0  ;;  %v1797_v3 = vld [vmem:[#allocation5] sm:$0xff]  ;;  %v1802_v5 = vld [vmem:[#allocation7 + $0x28] sm:$0xff]  ;;  %s1281_s8 = sshll.u32 %s1680_s25, 3  ;;  %s1176_s19 = sshll.u32 %s1770_s17, 3 }
  0x3a   : > { %428 = vmatpush.bf16.msra.mxu1 %v1790_v1  ;;  %v343_v4 = vld [vmem:[%s1774_s11] sm:$0xff]  ;;  %466 = vmatpush.bf16.msra.mxu3 %v1790_v1  ;;  %v1810_v7 = vld [vmem:[#allocation7 + $0x20] sm:$0xff]  ;;  %v1817_v8 = vld [vmem:[#allocation7 + $0x18] sm:$0xff]  ;;  %s1059_s30 = scalar_lea.hbm %s2064_s6, %s1281_s8  ;;  %s320_s16 = scalar_lea.vmem [#allocation10], %s1176_s19 }
  0x3b   : > { %v344_v6 = vpack.c.bf16 %v343_v4, %v343_v4  ;;  %v1822_v9 = vld [vmem:[#allocation7 + $0x10] sm:$0xff]  ;;  %v1827_v10 = vld [vmem:[#allocation7 + $0x8] sm:$0xff]  ;;  %v1832_v11 = vld [vmem:[#allocation7] sm:$0xff]  ;;  %s1061_s14 = sshll.u32 %s320_s16, 4  ;;  %s1063_s20 = sshll.u32 %s1059_s30, 4  ;;  %s1062_s14 = int_to_ptr.vmem [resolvable:$true] %s1061_s14  ;;  %s1064_s20 = int_to_ptr.hbm [resolvable:$true] %s1063_s20 }
  0x3c   : > { %v1218_v13 = vld [vmem:[%s1774_s11 + $0x8] sm:$0xff]  ;;  %v1871_v17 = vld [vmem:[%s2061_s3] ss:$0 sm:$0xff]  ;;  %v1220_v25 = vld [vmem:[%s1774_s11 + $0x10] sm:$0xff]  ;;  %s1049_s9 = scalar_lea.sflag [#allocation4], %s1770_s17  ;;  %s1553_s25 = sshra.s32 %s1064_s20, 4  ;;  %s1554_s25 = int_to_ptr.hbm [resolvable:$true] %s1553_s25 }
  0x3d   : > { %394 = vmatpush.bf16.msra.mxu0 %v1793_v2  ;;  %445 = vmatpush.bf16.msra.mxu2 %v1793_v2  ;;  %v442_v14 = vpack.c.bf16 %v1218_v13, %v1218_v13  ;;  %v477_v26 = vpack.c.bf16 %v1220_v25, %v1220_v25  ;;  %v1222_v36 = vld [vmem:[%s1774_s11 + $0x18] sm:$0xff]  ;;  %v1224_v46 = vld [vmem:[%s1774_s11 + $0x20] sm:$0xff]  ;;  %v1226_v56 = vld [vmem:[%s1774_s11 + $0x28] sm:$0xff]  ;;  %s1555_s10 = scalar_lea.hbm %s1554_s25, 8  ;;  %s1559_s27 = scalar_lea.hbm %s2064_s6, 16 }
  0x3e   : > { %429 = vmatpush.bf16.msra.mxu1 %v1797_v3  ;;  %467 = vmatpush.bf16.msra.mxu3 %v1797_v3  ;;  %v512_v37 = vpack.c.bf16 %v1222_v36, %v1222_v36  ;;  %v547_v47 = vpack.c.bf16 %v1224_v46, %v1224_v46  ;;  %v582_v57 = vpack.c.bf16 %v1226_v56, %v1226_v56  ;;  %p1556_p1 = scmp.ne.s32.totalorder %s1554_s25, %s1555_s10  ;;  %p1560_p11 = scmp.lt.s32.totalorder %s1554_s25, %s2064_s6 }
  0x3f   : > { %p1561_p9 = scmp.lt.s32.totalorder %s1559_s27, %s1555_s10 }
  0x40   : > { %p1557_p4 = pnand %p1556_p1, %p1742_p7 }
  0x41   : > { %395 = vmatpush.bf16.msra.mxu0 %v1802_v5  ;;  %1217 = vmatmul.msk.bf16.vlgmr.msra.gmra.mxu1 %vm418_vm0, %v344_v6  ;;  %p1562_p2 = por %p1561_p9, %p1560_p11 }
  0x42   : > { %479 = vmatpush.bf16.msrb.mxu1 %v1788_v0  ;;  %501 = vmatpush.bf16.msrb.mxu3 %v1790_v1  ;;  %p1558_p8 = pneg %p1557_p4 }
  0x43   : > { %446 = vmatpush.bf16.msra.mxu2 %v1802_v5  ;;  %1219 = vmatmul.msk.bf16.vlgmr.msra.gmra.mxu3 %vm418_vm0, %v442_v14 }
  0x44   : > { %p1563_p10 = pnand %p1562_p2, %p1558_p8 }
  0x45   : > { %396 = vmatpush.bf16.msra.mxu0 %v1810_v7 }
  0x46   : > { %480 = vmatpush.bf16.msrb.mxu1 %v1793_v2  ;;  %502 = vmatpush.bf16.msrb.mxu3 %v1797_v3 }
  0x47   : > { %447 = vmatpush.bf16.msra.mxu2 %v1810_v7 }
  0x49   : > { %397 = vmatpush.bf16.msra.mxu0 %v1817_v8 }
  0x4a   : > { %481 = vmatpush.bf16.msrb.mxu1 %v1802_v5  ;;  %514 = vmatpush.bf16.msra.mxu3 %v1788_v0 }
  0x4b   : > { %448 = vmatpush.bf16.msra.mxu2 %v1817_v8 }
  0x4d   : > { %398 = vmatpush.bf16.msra.mxu0 %v1822_v9 }
  0x4e   : > { %482 = vmatpush.bf16.msrb.mxu1 %v1810_v7  ;;  %515 = vmatpush.bf16.msra.mxu3 %v1793_v2 }
  0x4f   : > { %449 = vmatpush.bf16.msra.mxu2 %v1822_v9 }
  0x51   : > { %399 = vmatpush.bf16.msra.mxu0 %v1827_v10 }
  0x52   : > { %483 = vmatpush.bf16.msrb.mxu1 %v1817_v8  ;;  %516 = vmatpush.bf16.msra.mxu3 %v1802_v5 }
  0x53   : > { %450 = vmatpush.bf16.msra.mxu2 %v1827_v10  ;;  %1221 = vmatmul.msk.bf16.vlgmr.msrb.gmra.mxu3 %vm418_vm0, %v477_v26 }
  0x55   : > { %400 = vmatpush.bf16.msra.mxu0 %v1832_v11 }
  0x56   : > { %484 = vmatpush.bf16.msrb.mxu1 %v1822_v9  ;;  %517 = vmatpush.bf16.msra.mxu3 %v1810_v7 }
  0x57   : > { %451 = vmatpush.bf16.msra.mxu2 %v1832_v11 }
  0x58   : > { %401 = vmatmul.bf16.vlgmr.msra.gmra.mxu0 %v1623_v12 }
  0x59   : > { %536 = vmatpush.bf16.msrb.mxu0 %v1790_v1 }
  0x5a   : > { %485 = vmatpush.bf16.msrb.mxu1 %v1827_v10  ;;  %518 = vmatpush.bf16.msra.mxu3 %v1817_v8 }
  0x5b   : > { %549 = vmatpush.bf16.msrb.mxu2 %v1788_v0 }
  0x5d   : > { %537 = vmatpush.bf16.msrb.mxu0 %v1797_v3 }
  0x5e   : > { %486 = vmatpush.bf16.msrb.mxu1 %v1832_v11  ;;  %519 = vmatpush.bf16.msra.mxu3 %v1822_v9 }
  0x5f   : > { %550 = vmatpush.bf16.msrb.mxu2 %v1793_v2 }
  0x61   : > { %584 = vmatpush.bf16.msra.mxu0 %v1788_v0 }
  0x62   : > { %571 = vmatpush.bf16.msra.mxu1 %v1790_v1  ;;  %520 = vmatpush.bf16.msra.mxu3 %v1827_v10 }
  0x63   : > { %551 = vmatpush.bf16.msrb.mxu2 %v1802_v5 }
  0x65   : > { %585 = vmatpush.bf16.msra.mxu0 %v1793_v2 }
  0x66   : > { %572 = vmatpush.bf16.msra.mxu1 %v1797_v3  ;;  %521 = vmatpush.bf16.msra.mxu3 %v1832_v11 }
  0x67   : > { %552 = vmatpush.bf16.msrb.mxu2 %v1810_v7 }
  0x68   : > { %1223 = vmatmul.msk.bf16.vlgmr.msrb.gmra.mxu0 %vm418_vm0, %v512_v37 }
  0x69   : > { %586 = vmatpush.bf16.msra.mxu0 %v1802_v5 }
  0x6a   : > { %619 = vmatpush.bf16.msrb.mxu3 %v1788_v0 }
  0x6b   : > { %553 = vmatpush.bf16.msrb.mxu2 %v1817_v8 }
  0x6d   : > { %587 = vmatpush.bf16.msra.mxu0 %v1810_v7 }
  0x6e   : > { %620 = vmatpush.bf16.msrb.mxu3 %v1793_v2 }
  0x6f   : > { %554 = vmatpush.bf16.msrb.mxu2 %v1822_v9 }
  0x71   : > { %588 = vmatpush.bf16.msra.mxu0 %v1817_v8 }
  0x72   : > { %621 = vmatpush.bf16.msrb.mxu3 %v1802_v5 }
  0x73   : > { %555 = vmatpush.bf16.msrb.mxu2 %v1827_v10 }
  0x75   : > { %589 = vmatpush.bf16.msra.mxu0 %v1822_v9 }
  0x76   : > { %622 = vmatpush.bf16.msrb.mxu3 %v1810_v7 }
  0x77   : > { %556 = vmatpush.bf16.msrb.mxu2 %v1832_v11 }
  0x79   : > { %590 = vmatpush.bf16.msra.mxu0 %v1827_v10 }
  0x7a   : > { %623 = vmatpush.bf16.msrb.mxu3 %v1817_v8 }
  0x7d   : > { %591 = vmatpush.bf16.msra.mxu0 %v1832_v11 }
  0x7e   : > { %624 = vmatpush.bf16.msrb.mxu3 %v1822_v9 }
  0x81   : > { %676 = vmatpush.bf16.msrb.mxu0 %v1790_v1 }
  0x82   : > { %625 = vmatpush.bf16.msrb.mxu3 %v1827_v10 }
  0x85   : > { %677 = vmatpush.bf16.msrb.mxu0 %v1797_v3 }
  0x86   : > { %626 = vmatpush.bf16.msrb.mxu3 %v1832_v11 }
  0xbe   : > { %v431_v15 = vpop.f32.mrf.mxu1 }
  0xc6   : > { %v433_v16 = vpop.f32.mrf.mxu1  ;;  %v469_v24 = vpop.f32.mrf.mxu3 }
  0xce   : > { %v471_v27 = vpop.f32.mrf.mxu3 }
  0xd5   : > { %v402_v18 = vpop.f32.mrf.mxu0 }
  0xd6   : > { %v432_v19 = vadd.f32 %v431_v15, %v402_v18  ;;  %v504_v34 = vpop.f32.mrf.mxu3 }
  0xd8   : > { %v438_v20 = vadd.f32 %v1871_v17, %v432_v19  ;;  %v1228_v19 = vld [vmem:[%s1774_s11 + $0x30] sm:$0xff] }
  0xda   : > { %1387 = vtanh.f32 %v438_v20  ;;  %v617_v20 = vpack.c.bf16 %v1228_v19, %v1228_v19 }
  0xdd   : > { %v404_v21 = vpop.f32.mrf.mxu0 }
  0xde   : > { %v506_v35 = vpop.f32.mrf.mxu3  ;;  %v1230_v21 = vld [vmem:[%s1774_s11 + $0x38] sm:$0xff] }
  0xe0   : > { %v1388_v22 = vpop.eup %1387 }
  0xe1   : > { %v443_v23 = vpack.c.bf16 %v1388_v22, %v1388_v22  ;;  %v652_v22 = vpack.c.bf16 %v1230_v21, %v1230_v21 }
  0xe3   : > { %452 = vmatmul.bf16.vlgmr.msra.gmra.mxu2 %v443_v23 }
  0xe4   : > { %689 = vmatpush.bf16.msra.mxu2 %v1788_v0 }
  0xe5   : > { %v539_v44 = vpop.f32.mrf.mxu0 }
  0xe8   : > { %690 = vmatpush.bf16.msra.mxu2 %v1793_v2 }
  0xec   : > { %691 = vmatpush.bf16.msra.mxu2 %v1802_v5 }
  0xed   : > { %v541_v45 = vpop.f32.mrf.mxu0 }
  0xf0   : > { %692 = vmatpush.bf16.msra.mxu2 %v1810_v7 }
  0xf4   : > { %693 = vmatpush.bf16.msra.mxu2 %v1817_v8 }
  0xf8   : > { %694 = vmatpush.bf16.msra.mxu2 %v1822_v9 }
  0xfc   : > { %695 = vmatpush.bf16.msra.mxu2 %v1827_v10 }
 0x100   : > { %696 = vmatpush.bf16.msra.mxu2 %v1832_v11 }
 0x166   : > { %v453_v28 = vpop.f32.mrf.mxu2 }
 0x167   : > { %v470_v29 = vadd.f32 %v469_v24, %v453_v28 }
 0x169   : > { %v473_v30 = vadd.f32 %v1871_v17, %v470_v29 }
 0x16b   : > { %1389 = vtanh.f32 %v473_v30 }
 0x16e   : > { %v455_v31 = vpop.f32.mrf.mxu2 }
 0x171   : > { %v1390_v32 = vpop.eup %1389 }
 0x172   : > { %v478_v33 = vpack.c.bf16 %v1390_v32, %v1390_v32 }
 0x174   : > { %487 = vmatmul.bf16.vlgmr.msrb.gmra.mxu1 %v478_v33  ;;  %v1232_v33 = vld [vmem:[%s1774_s11 + $0x40] sm:$0xff] }
 0x175   : > { %606 = vmatpush.bf16.msrb.mxu1 %v1790_v1 }
 0x179   : > { %607 = vmatpush.bf16.msrb.mxu1 %v1797_v3 }
 0x184   : > { %1225 = vmatmul.msk.bf16.vlgmr.msra.gmra.mxu1 %vm418_vm0, %v547_v47 }
 0x185   : > { %654 = vmatpush.bf16.msra.mxu1 %v1788_v0 }
 0x189   : > { %655 = vmatpush.bf16.msra.mxu1 %v1793_v2 }
 0x18d   : > { %656 = vmatpush.bf16.msra.mxu1 %v1802_v5 }
 0x191   : > { %657 = vmatpush.bf16.msra.mxu1 %v1810_v7 }
 0x194   : > { %1227 = vmatmul.msk.bf16.vlgmr.msrb.gmra.mxu1 %vm418_vm0, %v582_v57 }
 0x195   : > { %658 = vmatpush.bf16.msra.mxu1 %v1817_v8 }
 0x199   : > { %659 = vmatpush.bf16.msra.mxu1 %v1822_v9 }
 0x19d   : > { %660 = vmatpush.bf16.msra.mxu1 %v1827_v10 }
 0x1a1   : > { %661 = vmatpush.bf16.msra.mxu1 %v1832_v11 }
 0x1a5   : > { %746 = vmatpush.bf16.msrb.mxu1 %v1790_v1 }
 0x1a9   : > { %747 = vmatpush.bf16.msrb.mxu1 %v1797_v3 }
 0x1f1   : > { %v488_v38 = vpop.f32.mrf.mxu1 }
 0x1f2   : > { %v505_v39 = vadd.f32 %v504_v34, %v488_v38  ;;  %v687_v34 = vpack.c.bf16 %v1232_v33, %v1232_v33 }
 0x1f4   : > { %v508_v40 = vadd.f32 %v1871_v17, %v505_v39 }
 0x1f6   : > { %1391 = vtanh.f32 %v508_v40 }
 0x1f9   : > { %v490_v41 = vpop.f32.mrf.mxu1 }
 0x1fc   : > { %v1392_v42 = vpop.eup %1391 }
 0x1fd   : > { %v513_v43 = vpack.c.bf16 %v1392_v42, %v1392_v42 }
 0x1ff   : > { %522 = vmatmul.bf16.vlgmr.msra.gmra.mxu3 %v513_v43  ;;  %v1234_v43 = vld [vmem:[%s1774_s11 + $0x48] sm:$0xff] }
 0x200   : > { %641 = vmatpush.bf16.msra.mxu3 %v1790_v1 }
 0x201   : > { %v574_v54 = vpop.f32.mrf.mxu1 }
 0x204   : > { %642 = vmatpush.bf16.msra.mxu3 %v1797_v3 }
 0x209   : > { %v576_v55 = vpop.f32.mrf.mxu1 }
 0x211   : > { %v609_v4 = vpop.f32.mrf.mxu1 }
 0x219   : > { %v611_v6 = vpop.f32.mrf.mxu1 }
 0x282   : > { %v523_v48 = vpop.f32.mrf.mxu3 }
 0x283   : > { %v540_v49 = vadd.f32 %v539_v44, %v523_v48  ;;  %v722_v44 = vpack.c.bf16 %v1234_v43, %v1234_v43  ;;  %v1300_v43 = vld [vmem:[#allocation8 + $0x30] sm:$0xff] }
 0x285   : > { %v543_v50 = vadd.f32 %v1871_v17, %v540_v49 }
 0x287   : > { %1393 = vtanh.f32 %v543_v50 }
 0x28a   : > { %v525_v51 = vpop.f32.mrf.mxu3 }
 0x28d   : > { %v1394_v52 = vpop.eup %1393 }
 0x28e   : > { %v548_v53 = vpack.c.bf16 %v1394_v52, %v1394_v52 }
 0x290   : > { %557 = vmatmul.bf16.vlgmr.msrb.gmra.mxu2 %v548_v53  ;;  %v1236_v53 = vld [vmem:[%s1774_s11 + $0x50] sm:$0xff] }
 0x291   : > { %781 = vmatpush.bf16.msrb.mxu2 %v1790_v1 }
 0x295   : > { %782 = vmatpush.bf16.msrb.mxu2 %v1797_v3 }
 0x313   : > { %v558_v58 = vpop.f32.mrf.mxu2 }
 0x314   : > { %v575_v59 = vadd.f32 %v574_v54, %v558_v58  ;;  %v757_v54 = vpack.c.bf16 %v1236_v53, %v1236_v53 }
 0x316   : > { %v578_v60 = vadd.f32 %v1871_v17, %v575_v59 }
 0x318   : > { %1395 = vtanh.f32 %v578_v60 }
 0x31b   : > { %v560_v61 = vpop.f32.mrf.mxu2 }
 0x31e   : > { %v1396_v62 = vpop.eup %1395 }
 0x31f   : > { %v583_v63 = vpack.c.bf16 %v1396_v62, %v1396_v62 }
 0x321   : > { %592 = vmatmul.bf16.vlgmr.msra.gmra.mxu0 %v583_v63  ;;  %v1238_v63 = vld [vmem:[%s1774_s11 + $0x58] sm:$0xff] }
 0x322   : > { %724 = vmatpush.bf16.msra.mxu0 %v1788_v0 }
 0x326   : > { %725 = vmatpush.bf16.msra.mxu0 %v1793_v2 }
 0x32a   : > { %726 = vmatpush.bf16.msra.mxu0 %v1802_v5 }
 0x32e   : > { %727 = vmatpush.bf16.msra.mxu0 %v1810_v7 }
 0x331   : > { %1231 = vmatmul.msk.bf16.vlgmr.msrb.gmra.mxu0 %vm418_vm0, %v652_v22 }
 0x332   : > { %728 = vmatpush.bf16.msra.mxu0 %v1817_v8 }
 0x336   : > { %729 = vmatpush.bf16.msra.mxu0 %v1822_v9 }
 0x33a   : > { %730 = vmatpush.bf16.msra.mxu0 %v1827_v10 }
 0x33e   : > { %731 = vmatpush.bf16.msra.mxu0 %v1832_v11 }
 0x342   : > { %816 = vmatpush.bf16.msrb.mxu0 %v1790_v1 }
 0x346   : > { %817 = vmatpush.bf16.msrb.mxu0 %v1797_v3 }
 0x39e   : > { %v593_v12 = vpop.f32.mrf.mxu0 }
 0x39f   : > { %v610_v13 = vadd.f32 %v609_v4, %v593_v12  ;;  %v792_v4 = vpack.c.bf16 %v1238_v63, %v1238_v63 }
 0x3a1   : > { %v613_v14 = vadd.f32 %v1871_v17, %v610_v13 }
 0x3a3   : > { %1397 = vtanh.f32 %v613_v14 }
 0x3a6   : > { %v595_v15 = vpop.f32.mrf.mxu0 }
 0x3a9   : > { %v1398_v16 = vpop.eup %1397 }
 0x3aa   : > { %v618_v18 = vpack.c.bf16 %v1398_v16, %v1398_v16 }
 0x3ac   : > { %627 = vmatmul.bf16.vlgmr.msrb.gmra.mxu3 %v618_v18  ;;  %v1240_v18 = vld [vmem:[%s1774_s11 + $0x60] sm:$0xff] }
 0x3ad   : > { %711 = vmatpush.bf16.msrb.mxu3 %v1790_v1  ;;  %v827_v19 = vpack.c.bf16 %v1240_v18, %v1240_v18 }
 0x3ae   : > { %v679_v31 = vpop.f32.mrf.mxu0 }
 0x3b1   : > { %712 = vmatpush.bf16.msrb.mxu3 %v1797_v3 }
 0x3b6   : > { %v681_v32 = vpop.f32.mrf.mxu0 }
 0x3bc   : > { %1229 = vmatmul.msk.bf16.vlgmr.msra.gmra.mxu3 %vm418_vm0, %v617_v20 }
 0x3bd   : > { %759 = vmatpush.bf16.msra.mxu3 %v1788_v0 }
 0x3c1   : > { %760 = vmatpush.bf16.msra.mxu3 %v1793_v2 }
 0x3c5   : > { %761 = vmatpush.bf16.msra.mxu3 %v1802_v5 }
 0x3c9   : > { %762 = vmatpush.bf16.msra.mxu3 %v1810_v7 }
 0x3cc   : > { %1233 = vmatmul.msk.bf16.vlgmr.msrb.gmra.mxu3 %vm418_vm0, %v687_v34 }
 0x3cd   : > { %763 = vmatpush.bf16.msra.mxu3 %v1817_v8 }
 0x3d1   : > { %764 = vmatpush.bf16.msra.mxu3 %v1822_v9 }
 0x3d5   : > { %765 = vmatpush.bf16.msra.mxu3 %v1827_v10 }
 0x3d9   : > { %766 = vmatpush.bf16.msra.mxu3 %v1832_v11 }
 0x3dd   : > { %851 = vmatpush.bf16.msrb.mxu3 %v1790_v1 }
 0x3e1   : > { %852 = vmatpush.bf16.msrb.mxu3 %v1797_v3 }
 0x42f   : > { %v628_v23 = vpop.f32.mrf.mxu3 }
 0x437   : > { %v630_v24 = vpop.f32.mrf.mxu3 }
 0x43f   : > { %v644_v25 = vpop.f32.mrf.mxu3 }
 0x440   : > { %v645_v26 = vadd.f32 %v644_v25, %v628_v23 }
 0x442   : > { %v648_v27 = vadd.f32 %v1871_v17, %v645_v26 }
 0x444   : > { %1399 = vtanh.f32 %v648_v27 }
 0x447   : > { %v646_v28 = vpop.f32.mrf.mxu3 }
 0x44a   : > { %v1400_v29 = vpop.eup %1399 }
 0x44b   : > { %v653_v30 = vpack.c.bf16 %v1400_v29, %v1400_v29 }
 0x44d   : > { %662 = vmatmul.bf16.vlgmr.msra.gmra.mxu1 %v653_v30  ;;  %v1244_v30 = vld [vmem:[%s1774_s11 + $0x70] sm:$0xff] }
 0x44e   : > { %794 = vmatpush.bf16.msra.mxu1 %v1788_v0 }
 0x44f   : > { %v714_v41 = vpop.f32.mrf.mxu3 }
 0x452   : > { %795 = vmatpush.bf16.msra.mxu1 %v1793_v2 }
 0x456   : > { %796 = vmatpush.bf16.msra.mxu1 %v1802_v5 }
 0x457   : > { %v716_v42 = vpop.f32.mrf.mxu3 }
 0x458   : > { %v1301_v42 = vld [vmem:[#allocation8 + $0x38] sm:$0xff] }
 0x45a   : > { %797 = vmatpush.bf16.msra.mxu1 %v1810_v7 }
 0x45d   : > { %1235 = vmatmul.msk.bf16.vlgmr.msrb.gmra.mxu1 %vm418_vm0, %v722_v44  ;;  %v1299_v44 = vld [vmem:[#allocation8 + $0x28] sm:$0xff] }
 0x45e   : > { %798 = vmatpush.bf16.msra.mxu1 %v1817_v8 }
 0x462   : > { %799 = vmatpush.bf16.msra.mxu1 %v1822_v9 }
 0x466   : > { %800 = vmatpush.bf16.msra.mxu1 %v1827_v10 }
 0x46a   : > { %801 = vmatpush.bf16.msra.mxu1 %v1832_v11 }
 0x46e   : > { %886 = vmatpush.bf16.msrb.mxu1 %v1790_v1 }
 0x472   : > { %887 = vmatpush.bf16.msrb.mxu1 %v1797_v3 }
 0x4ca   : > { %v663_v35 = vpop.f32.mrf.mxu1 }
 0x4cb   : > { %v680_v36 = vadd.f32 %v679_v31, %v663_v35  ;;  %v897_v31 = vpack.c.bf16 %v1244_v30, %v1244_v30 }
 0x4cd   : > { %v683_v37 = vadd.f32 %v1871_v17, %v680_v36 }
 0x4cf   : > { %1401 = vtanh.f32 %v683_v37 }
 0x4d2   : > { %v665_v38 = vpop.f32.mrf.mxu1 }
 0x4d5   : > { %v1402_v39 = vpop.eup %1401 }
 0x4d6   : > { %v688_v40 = vpack.c.bf16 %v1402_v39, %v1402_v39 }
 0x4d8   : > { %697 = vmatmul.bf16.vlgmr.msra.gmra.mxu2 %v688_v40  ;;  %v1246_v40 = vld [vmem:[%s1774_s11 + $0x78] sm:$0xff] }
 0x4d9   : > { %829 = vmatpush.bf16.msra.mxu2 %v1788_v0 }
 0x4da   : > { %v749_v51 = vpop.f32.mrf.mxu1 }
 0x4dd   : > { %830 = vmatpush.bf16.msra.mxu2 %v1793_v2 }
 0x4e1   : > { %831 = vmatpush.bf16.msra.mxu2 %v1802_v5 }
 0x4e2   : > { %v751_v52 = vpop.f32.mrf.mxu1 }
 0x4e3   : > { %v1297_v52 = vld [vmem:[#allocation8 + $0x18] sm:$0xff] }
 0x4e5   : > { %832 = vmatpush.bf16.msra.mxu2 %v1810_v7 }
 0x4e8   : > { %1237 = vmatmul.msk.bf16.vlgmr.msrb.gmra.mxu2 %vm418_vm0, %v757_v54 }
 0x4e9   : > { %833 = vmatpush.bf16.msra.mxu2 %v1817_v8 }
 0x4ed   : > { %834 = vmatpush.bf16.msra.mxu2 %v1822_v9 }
 0x4f1   : > { %835 = vmatpush.bf16.msra.mxu2 %v1827_v10 }
 0x4f5   : > { %836 = vmatpush.bf16.msra.mxu2 %v1832_v11 }
 0x4f9   : > { %921 = vmatpush.bf16.msrb.mxu2 %v1790_v1 }
 0x4fd   : > { %922 = vmatpush.bf16.msrb.mxu2 %v1797_v3 }
 0x55b   : > { %v698_v45 = vpop.f32.mrf.mxu2 }
 0x55c   : > { %v715_v46 = vadd.f32 %v714_v41, %v698_v45  ;;  %v932_v41 = vpack.c.bf16 %v1246_v40, %v1246_v40 }
 0x55e   : > { %v718_v47 = vadd.f32 %v1871_v17, %v715_v46 }
 0x560   : > { %1403 = vtanh.f32 %v718_v47 }
 0x563   : > { %v700_v48 = vpop.f32.mrf.mxu2 }
 0x566   : > { %v1404_v49 = vpop.eup %1403 }
 0x567   : > { %v723_v50 = vpack.c.bf16 %v1404_v49, %v1404_v49 }
 0x569   : > { %732 = vmatmul.bf16.vlgmr.msra.gmra.mxu0 %v723_v50 }
 0x56a   : > { %864 = vmatpush.bf16.msra.mxu0 %v1788_v0 }
 0x56b   : > { %v784_v61 = vpop.f32.mrf.mxu2 }
 0x56e   : > { %865 = vmatpush.bf16.msra.mxu0 %v1793_v2 }
 0x572   : > { %866 = vmatpush.bf16.msra.mxu0 %v1802_v5 }
 0x573   : > { %v786_v62 = vpop.f32.mrf.mxu2 }
 0x576   : > { %867 = vmatpush.bf16.msra.mxu0 %v1810_v7 }
 0x579   : > { %1239 = vmatmul.msk.bf16.vlgmr.msrb.gmra.mxu0 %vm418_vm0, %v792_v4  ;;  %v1386_v4 = vld [vmem:[%s2063_s5] ss:$0 sm:$0xff] }
 0x57a   : > { %868 = vmatpush.bf16.msra.mxu0 %v1817_v8 }
 0x57e   : > { %869 = vmatpush.bf16.msra.mxu0 %v1822_v9 }
 0x582   : > { %870 = vmatpush.bf16.msra.mxu0 %v1827_v10 }
 0x586   : > { %871 = vmatpush.bf16.msra.mxu0 %v1832_v11 }
 0x58a   : > { %956 = vmatpush.bf16.msrb.mxu0 %v1790_v1 }
 0x58e   : > { %957 = vmatpush.bf16.msrb.mxu0 %v1797_v3 }
 0x5e6   : > { %v733_v55 = vpop.f32.mrf.mxu0 }
 0x5e7   : > { %v750_v56 = vadd.f32 %v749_v51, %v733_v55  ;;  %v1298_v51 = vld [vmem:[#allocation8 + $0x20] sm:$0xff]  ;;  %v1296_v55 = vld [vmem:[#allocation8 + $0x10] sm:$0xff] }
 0x5e9   : > { %v753_v57 = vadd.f32 %v1871_v17, %v750_v56  ;;  %v1295_v56 = vld [vmem:[#allocation8 + $0x8] sm:$0xff] }
 0x5eb   : > { %1405 = vtanh.f32 %v753_v57  ;;  %v1294_v57 = vld [vmem:[#allocation8] sm:$0xff] }
 0x5ee   : > { %v735_v58 = vpop.f32.mrf.mxu0 }
 0x5f1   : > { %v1406_v59 = vpop.eup %1405 }
 0x5f2   : > { %v758_v60 = vpack.c.bf16 %v1406_v59, %v1406_v59 }
 0x5f4   : > { %767 = vmatmul.bf16.vlgmr.msra.gmra.mxu3 %v758_v60 }
 0x5f5   : > { %899 = vmatpush.bf16.msra.mxu3 %v1788_v0 }
 0x5f6   : > { %v819_v1 = vpop.f32.mrf.mxu0 }
 0x5f9   : > { %900 = vmatpush.bf16.msra.mxu3 %v1793_v2 }
 0x5fd   : > { %901 = vmatpush.bf16.msra.mxu3 %v1802_v5 }
 0x5fe   : > { %v821_v3 = vpop.f32.mrf.mxu0 }
 0x601   : > { %902 = vmatpush.bf16.msra.mxu3 %v1810_v7 }
 0x604   : > { %1241 = vmatmul.msk.bf16.vlgmr.msrb.gmra.mxu3 %vm418_vm0, %v827_v19 }
 0x605   : > { %903 = vmatpush.bf16.msra.mxu3 %v1817_v8 }
 0x609   : > { %904 = vmatpush.bf16.msra.mxu3 %v1822_v9 }
 0x60d   : > { %905 = vmatpush.bf16.msra.mxu3 %v1827_v10 }
 0x611   : > { %906 = vmatpush.bf16.msra.mxu3 %v1832_v11 }
 0x677   : > { %v768_v6 = vpop.f32.mrf.mxu3 }
 0x678   : > { %v785_v12 = vadd.f32 %v784_v61, %v768_v6 }
 0x67a   : > { %v788_v13 = vadd.f32 %v1871_v17, %v785_v12 }
 0x67c   : > { %1407 = vtanh.f32 %v788_v13 }
 0x67f   : > { %v770_v14 = vpop.f32.mrf.mxu3 }
 0x682   : > { %v1408_v15 = vpop.eup %1407 }
 0x683   : > { %v793_v16 = vpack.c.bf16 %v1408_v15, %v1408_v15 }
 0x685   : > { %802 = vmatmul.bf16.vlgmr.msra.gmra.mxu1 %v793_v16 }
 0x686   : > { %934 = vmatpush.bf16.msra.mxu1 %v1788_v0 }
 0x68a   : > { %935 = vmatpush.bf16.msra.mxu1 %v1793_v2 }
 0x68e   : > { %936 = vmatpush.bf16.msra.mxu1 %v1802_v5 }
 0x692   : > { %937 = vmatpush.bf16.msra.mxu1 %v1810_v7 }
 0x696   : > { %938 = vmatpush.bf16.msra.mxu1 %v1817_v8 }
 0x69a   : > { %939 = vmatpush.bf16.msra.mxu1 %v1822_v9  ;;  %v854_v9 = vpop.f32.mrf.mxu3 }
 0x69e   : > { %940 = vmatpush.bf16.msra.mxu1 %v1827_v10 }
 0x6a2   : > { %941 = vmatpush.bf16.msra.mxu1 %v1832_v11  ;;  %v856_v10 = vpop.f32.mrf.mxu3  ;;  %v1242_v11 = vld [vmem:[%s1774_s11 + $0x68] sm:$0xff] }
 0x6a3   : > { %v862_v21 = vpack.c.bf16 %v1242_v11, %v1242_v11 }
 0x6a5   : > { %1243 = vmatmul.msk.bf16.vlgmr.msrb.gmra.mxu1 %vm418_vm0, %v862_v21 }
 0x702   : > { %v803_v0 = vpop.f32.mrf.mxu1 }
 0x703   : > { %v820_v2 = vadd.f32 %v819_v1, %v803_v0 }
 0x705   : > { %v823_v5 = vadd.f32 %v1871_v17, %v820_v2 }
 0x707   : > { %1409 = vtanh.f32 %v823_v5 }
 0x70a   : > { %v805_v7 = vpop.f32.mrf.mxu1 }
 0x70d   : > { %v1410_v8 = vpop.eup %1409 }
 0x70e   : > { %v828_v20 = vpack.c.bf16 %v1410_v8, %v1410_v8 }
 0x710   : > { %837 = vmatmul.bf16.vlgmr.msra.gmra.mxu2 %v828_v20 }
 0x711   : > { %1034 = vmatpush.bf16.msra.mxu2 %v1301_v42 }
 0x715   : > { %1035 = vmatpush.bf16.msra.mxu2 %v1300_v43 }
 0x719   : > { %1036 = vmatpush.bf16.msra.mxu2 %v1299_v44 }
 0x71d   : > { %1037 = vmatpush.bf16.msra.mxu2 %v1298_v51 }
 0x720   : > { %1245 = vmatmul.msk.bf16.vlgmr.msrb.gmra.mxu2 %vm418_vm0, %v897_v31 }
 0x721   : > { %1038 = vmatpush.bf16.msra.mxu2 %v1297_v52 }
 0x722   : > { %v889_v28 = vpop.f32.mrf.mxu1 }
 0x725   : > { %1039 = vmatpush.bf16.msra.mxu2 %v1296_v55 }
 0x729   : > { %1040 = vmatpush.bf16.msra.mxu2 %v1295_v56 }
 0x72a   : > { %v891_v29 = vpop.f32.mrf.mxu1 }
 0x72d   : > { %1041 = vmatpush.bf16.msra.mxu2 %v1294_v57 }
 0x793   : > { %v838_v22 = vpop.f32.mrf.mxu2 }
 0x794   : > { %v855_v23 = vadd.f32 %v854_v9, %v838_v22 }
 0x796   : > { %v858_v24 = vadd.f32 %v1871_v17, %v855_v23 }
 0x798   : > { %1411 = vtanh.f32 %v858_v24 }
 0x79b   : > { %v840_v25 = vpop.f32.mrf.mxu2 }
 0x79e   : > { %v1412_v26 = vpop.eup %1411 }
 0x79f   : > { %v863_v27 = vpack.c.bf16 %v1412_v26, %v1412_v26 }
 0x7a1   : > { %872 = vmatmul.bf16.vlgmr.msra.gmra.mxu0 %v863_v27 }
 0x7a3   : > { %v924_v38 = vpop.f32.mrf.mxu2 }
 0x7ab   : > { %v926_v39 = vpop.f32.mrf.mxu2 }
 0x7b1   : > { %1247 = vmatmul.msk.bf16.vlgmr.msrb.gmra.mxu0 %vm418_vm0, %v932_v41 }
 0x81e   : > { %v873_v32 = vpop.f32.mrf.mxu0 }
 0x81f   : > { %v890_v33 = vadd.f32 %v889_v28, %v873_v32 }
 0x821   : > { %v893_v34 = vadd.f32 %v1871_v17, %v890_v33 }
 0x823   : > { %1413 = vtanh.f32 %v893_v34 }
 0x826   : > { %v875_v35 = vpop.f32.mrf.mxu0 }
 0x829   : > { %v1414_v36 = vpop.eup %1413 }
 0x82a   : > { %v898_v37 = vpack.c.bf16 %v1414_v36, %v1414_v36 }
 0x82c   : > { %907 = vmatmul.bf16.vlgmr.msra.gmra.mxu3 %v898_v37 }
 0x82e   : > { %v959_v53 = vpop.f32.mrf.mxu0 }
 0x836   : > { %v961_v54 = vpop.f32.mrf.mxu0 }
 0x8af   : > { %v908_v45 = vpop.f32.mrf.mxu3 }
 0x8b0   : > { %v925_v46 = vadd.f32 %v924_v38, %v908_v45 }
 0x8b2   : > { %v928_v47 = vadd.f32 %v1871_v17, %v925_v46 }
 0x8b4   : > { %1415 = vtanh.f32 %v928_v47 }
 0x8b7   : > { %v910_v48 = vpop.f32.mrf.mxu3 }
 0x8ba   : > { %v1416_v49 = vpop.eup %1415 }
 0x8bb   : > { %v933_v50 = vpack.c.bf16 %v1416_v49, %v1416_v49 }
 0x8bd   : > { %942 = vmatmul.bf16.vlgmr.msra.gmra.mxu1 %v933_v50 }
 0x93a   : > { %v943_v58 = vpop.f32.mrf.mxu1 }
 0x93b   : > { %v960_v59 = vadd.f32 %v959_v53, %v943_v58 }
 0x93d   : > { %v963_v60 = vadd.f32 %v1871_v17, %v960_v59 }
 0x93f   : > { %1417 = vtanh.f32 %v963_v60 }
 0x942   : > { %v945_v61 = vpop.f32.mrf.mxu1 }
 0x945   : > { %v1418_v62 = vpop.eup %1417 }
 0x946   : > { %v965_v63 = vpack.c.bf16 %v1418_v62, %v1418_v62 }
 0x948   : > { %1042 = vmatmul.bf16.vlgmr.msra.gmra.mxu2 %v965_v63 }
 0x9cb   : > { %v1043_v17 = vpop.f32.mrf.mxu2 }
 0x9cc   : > { %v1044_v6 = vadd.f32 %v1386_v4, %v1043_v17 }
 0x9ce   : > { %1047 = vst [vmem:[%s320_s16] sm:$0xff] %v1044_v6 }
 0x9cf   : > { %1566 = shalt.err (!%p1563_p10)
}
 0x9d0   : > { %1316 = dma.vmem_to_hbm [thread:$0]  (%p1742_p7), %s1062_s14, 128, %s1064_s20, %s1049_s9  }
 0x9d3   : > { %v1045_v12 = vpop.f32.mrf.mxu2 }
 0x9d4 PF: > { %s1075_s17 = sand.u32 1, %s1601_s21   ;;  %p2073_p12 = scmp.ge.s32.totalorder %s1613_s24, 2 }
 0x9d5   : > { %s1076_s26 = scalar_lea.sflag [#allocation4], %s1075_s17 }
 0x9d6   : > { %p1333_p13 = pnand %p2073_p12, %p1694_p6 }
 0x9d8   : > { %p1334_p0 = pneg %p1333_p13 }
 0x9da   : > { %1596 = dma.done.wait (%p1334_p0), %s1076_s26, 128  }
 0x9db   : > { %1598 = vsyncadd (%p1334_p0), %s1076_s26, 4294967168  ;;  %p21_p3 = scmp.ge.s32.totalorder %s1726_s7, 4   ;;  %s2074_s21 = smov %s1605_s22 }
 0x9dc   : > { %s2075_s22 = smov %s1609_s23  ;;  %s2076_s23 = smov %s1738_s12 }
 0x9dd   : > { %s2077_s24 = smov %s1726_s7  ;;  %23 = sbr.rel (!%p21_p3) target bundleno = 9 (0x9), region = 116 }
 0x9e2   :  { %1082 = vsyncpa [#allocation3], 1 }
 0x9e3   :  { %1084 = vsyncpa [#allocation3 + $0x1], 1 }
 0x9e4   :  { %1085 = vsyncpa [#allocation6], 1 }
 0x9e5   :  { %1086 = vsyncpa [#allocation9], 1 }
 0x9e6   :  { %1087 = vsyncpa [#allocation4], 1 }
 0x9e7   :  { %1089 = vsyncpa [#allocation4 + $0x1], 1 }

</bundles_post_ra>
